<compile_context>
chip_gen: v5e
topology: v5e:2x2
jax: 0.10.0
libtpu: 0.0.40
codegen_flags: <defaults>
</compile_context>

<pallas_src>
import os

import jax
import jax.numpy as jnp
from jax.experimental import pallas as pl
from jax.experimental.pallas import tpu as pltpu

BOUND = int(os.environ.get("BOUND", "15"))


def _round_up(a, m):
    return pl.cdiv(a, m) * m


def _make_tai_kernel(n_paths, bound):
    """Kernel over one batch tile: out = sum_i clipped_sigmoid(X_i) @ W_i - Y."""

    def kernel(*refs):
        x_refs = refs[:n_paths]
        w_refs = refs[n_paths:2 * n_paths]
        y_ref = refs[2 * n_paths]
        o_ref = refs[2 * n_paths + 1]

        acc = None
        for x_ref, w_ref in zip(x_refs, w_refs):
            x = x_ref[...]                         # native dtype (bf16 stays bf16 on VPU)
            x32 = x.astype(jnp.float32)
            # sigmoid(x) == 0.5*(tanh(x/2)+1): keeps the nonlinearity on the EUP slot.
            sig = 0.5 * (jnp.tanh(0.5 * x32) + jnp.float32(1.0))
            nx = jnp.where(x >= bound, jnp.float32(1.0),
                           jnp.where(x <= -bound, jnp.float32(0.0), sig))
            w = w_ref[...]                         # (K_i, out_f), prepared once outside
            nx = nx.astype(w.dtype)                # bf16 x bf16 -> f32 MXU path for bf16 models
            part = jax.lax.dot_general(
                nx, w,
                dimension_numbers=(((1,), (0,)), ((), ())),
                preferred_element_type=jnp.float32)
            acc = part if acc is None else acc + part

        o_ref[...] = (acc - y_ref[...].astype(jnp.float32)).astype(o_ref.dtype)

    return kernel


def prepare_weights(weights):
    """One-time (amortized) weight prep: torch layout (out_f, in_f) -> (in_f, out_f).

    Weights are static across forward calls; the transpose is paid once here so
    the kernel feeds the MXU via the standard (((1,),(0,)),((),())) contraction
    with no per-grid-step relayout and no per-call weight materialization.
    """
    return [jnp.asarray(w).T for w in weights]


def _pick_batch_tiling(B):
    """Pick a batch tile minimizing padding waste."""
    if B <= 512:
        return B, B                                 # single full-batch block, zero padding
    best_tm, best_pad = None, None
    for tm in (512, 256, 128):
        b_pad = _round_up(B, tm)
        if best_pad is None or b_pad < best_pad:
            best_tm, best_pad = tm, b_pad
    return best_tm, best_pad


def time_averaged_inputs_forward(X, weights_t, Y, lesions, bound=BOUND):
    """
    X         : list of arrays, each [B, in_features_i]
    weights_t : list of arrays, each (in_features_i, out_features)
                (pre-transposed ONCE via prepare_weights; torch layout is (out, in))
    Y         : [B, out_features]
    lesions   : static Python list of 0/1
    """
    assert len(lesions) == len(X) == len(weights_t)
    if sum(lesions) == len(lesions):
        return 0  # matches the torch module exactly

    xs = [x for x, les in zip(X, lesions) if les != 1]
    ws = [w for w, les in zip(weights_t, lesions) if les != 1]
    n_paths = len(xs)

    B, out_f = Y.shape
    TM, B_pad = _pick_batch_tiling(B)

    if B_pad != B:  # only for large, awkward batch sizes
        xs = [jnp.pad(x, ((0, B_pad - B), (0, 0))) for x in xs]
        y_in = jnp.pad(Y, ((0, B_pad - B), (0, 0)))
    else:
        y_in = Y

    grid = (B_pad // TM,)

    in_specs = []
    for x in xs:
        in_specs.append(pl.BlockSpec((TM, x.shape[1]), lambda i: (i, 0)))   # X_i: walks batch
    for w in ws:
        in_specs.append(pl.BlockSpec((w.shape[0], w.shape[1]), lambda i: (0, 0)))  # W_i: resident
    in_specs.append(pl.BlockSpec((TM, out_f), lambda i: (i, 0)))            # Y tile
    out_spec = pl.BlockSpec((TM, out_f), lambda i: (i, 0))

    # Explicit VMEM budget from the actual (double-buffered) tile footprint,
    # capped at 64 MiB so the same code compiles on v7x.
    tile_bytes = 0
    for x in xs:
        tile_bytes += 2 * TM * x.shape[1] * x.dtype.itemsize
    for w in ws:
        tile_bytes += 2 * w.shape[0] * w.shape[1] * w.dtype.itemsize
    tile_bytes += 2 * TM * out_f * Y.dtype.itemsize      # Y tiles
    tile_bytes += 2 * TM * out_f * Y.dtype.itemsize      # out tiles
    tile_bytes += 2 * TM * out_f * 4                     # f32 accumulator headroom
    vmem_limit = int(min(64 * 1024 * 1024, max(32 * 1024 * 1024, 2 * tile_bytes)))

    flops = sum(2 * B_pad * x.shape[1] * out_f for x in xs)
    transcend = sum(B_pad * x.shape[1] for x in xs)
    bytes_acc = (sum(x.size * x.dtype.itemsize for x in xs)
                 + sum(w.size * w.dtype.itemsize for w in ws)
                 + y_in.size * Y.dtype.itemsize
                 + B_pad * out_f * Y.dtype.itemsize)
    cost = pl.CostEstimate(flops=flops, transcendentals=transcend,
                           bytes_accessed=bytes_acc)

    out = pl.pallas_call(
        _make_tai_kernel(n_paths, bound),
        out_shape=jax.ShapeDtypeStruct((B_pad, out_f), Y.dtype),
        grid=grid,
        in_specs=in_specs,
        out_specs=out_spec,
        compiler_params=pltpu.CompilerParams(
            dimension_semantics=("parallel",),
            vmem_limit_bytes=vmem_limit),
        cost_estimate=cost,
    )(*xs, *ws, y_in)

    return out[:B] if B_pad != B else out


def _reference(X, weights, Y, lesions, bound=BOUND):
    if sum(lesions) == len(lesions):
        return 0
    acc = 0.0
    for x, w, les in zip(X, weights, lesions):
        if les != 1:
            nx = jax.nn.sigmoid(x)
            nx = nx - (x <= -bound).astype(nx.dtype) * nx \
                    + (x >= bound).astype(nx.dtype) * (1.0 - nx)
            acc = acc + nx @ w.T
    return acc - Y


if __name__ == "__main__":
    key = jax.random.PRNGKey(0)
    B = 8
    in_features_list = [16, 32, 64]
    out_features = 32

    # Deterministic parameter init: uniform(-0.1, 0.1), torch Linear layout
    # (out_features, in_features), bias=False.
    weights = []
    for in_f in in_features_list:
        key, sub = jax.random.split(key)
        weights.append(jax.random.uniform(sub, (out_features, in_f),
                                          jnp.float32, -0.1, 0.1))

    # One-time weight preparation (amortized across all forward calls).
    weights_t = prepare_weights(weights)
    weights_t = [jax.block_until_ready(w) for w in weights_t]

    # Inputs (include values beyond +/- BOUND to exercise the clipping path).
    X = []
    for in_f in in_features_list:
        key, sub = jax.random.split(key)
        X.append(jax.random.normal(sub, (B, in_f), jnp.float32) * 10.0)
    key, sub = jax.random.split(key)
    Y = jax.random.normal(sub, (B, out_features), jnp.float32)

    lesions = [0, 1, 0]  # static binary lesions; middle pathway removed

    out = time_averaged_inputs_forward(X, weights_t, Y, lesions)
    out = jax.block_until_ready(out)

    ref = _reference(X, weights, Y, lesions)
    assert out.shape == ref.shape
    assert out.dtype == Y.dtype
    assert jnp.allclose(out, ref, atol=1e-4, rtol=1e-4), "mismatch vs reference"

    # All-lesioned path returns 0, like the torch module.
    assert time_averaged_inputs_forward(X, weights_t, Y, [1, 1, 1]) == 0

    print("KERNEL_OK")
</pallas_src>

<mosaic_0001>
module attributes {stable_mosaic.version = 11 : i64} {
  func.func @kernel(%arg0: i32, %arg1: memref<8x16xf32, #tpu.memory_space<vmem>>, %arg2: memref<8x64xf32, #tpu.memory_space<vmem>>, %arg3: memref<16x32xf32, #tpu.memory_space<vmem>>, %arg4: memref<64x32xf32, #tpu.memory_space<vmem>>, %arg5: memref<8x32xf32, #tpu.memory_space<vmem>>, %arg6: memref<8x32xf32, #tpu.memory_space<vmem>>) attributes {dimension_semantics = [#tpu.dimension_semantics<parallel>], iteration_bounds = array<i64: 1>, scalar_prefetch = 0 : i64, scratch_operands = 0 : i64, tpu.core_type = #tpu.core_type<tc>, window_params = [{transform_indices = @transform_0, window_bounds = array<i64: 8, 16>}, {transform_indices = @transform_1, window_bounds = array<i64: 8, 64>}, {pipeline_mode = #tpu.pipeline_mode<synchronous>, transform_indices = @transform_2, window_bounds = array<i64: 16, 32>}, {pipeline_mode = #tpu.pipeline_mode<synchronous>, transform_indices = @transform_3, window_bounds = array<i64: 64, 32>}, {transform_indices = @transform_4, window_bounds = array<i64: 8, 32>}, {transform_indices = @transform_5, window_bounds = array<i64: 8, 32>}]} {
    %c0 = arith.constant 0 : index
    %c0_0 = arith.constant 0 : index
    %0 = vector.load %arg1[%c0, %c0_0] : memref<8x16xf32, #tpu.memory_space<vmem>>, vector<8x16xf32>
    %cst = arith.constant 5.000000e-01 : f32
    %1 = vector.broadcast %cst : f32 to vector<8x16xf32>
    %2 = arith.mulf %1, %0 : vector<8x16xf32>
    %3 = math.tanh %2 : vector<8x16xf32>
    %cst_1 = arith.constant 1.000000e+00 : f32
    %4 = vector.broadcast %cst_1 : f32 to vector<8x16xf32>
    %5 = arith.addf %3, %4 : vector<8x16xf32>
    %cst_2 = arith.constant 5.000000e-01 : f32
    %6 = vector.broadcast %cst_2 : f32 to vector<8x16xf32>
    %7 = arith.mulf %6, %5 : vector<8x16xf32>
    %cst_3 = arith.constant 1.500000e+01 : f32
    %8 = vector.broadcast %cst_3 : f32 to vector<8x16xf32>
    %9 = arith.cmpf oge, %0, %8 : vector<8x16xf32>
    %cst_4 = arith.constant -1.500000e+01 : f32
    %10 = vector.broadcast %cst_4 : f32 to vector<8x16xf32>
    %11 = arith.cmpf ole, %0, %10 : vector<8x16xf32>
    %cst_5 = arith.constant 0.000000e+00 : f32
    %12 = vector.broadcast %cst_5 : f32 to vector<8x16xf32>
    %13 = arith.select %11, %12, %7 : vector<8x16xi1>, vector<8x16xf32>
    %cst_6 = arith.constant 1.000000e+00 : f32
    %14 = vector.broadcast %cst_6 : f32 to vector<8x16xf32>
    %15 = arith.select %9, %14, %13 : vector<8x16xi1>, vector<8x16xf32>
    %c0_7 = arith.constant 0 : index
    %c0_8 = arith.constant 0 : index
    %16 = vector.load %arg3[%c0_7, %c0_8] : memref<16x32xf32, #tpu.memory_space<vmem>>, vector<16x32xf32>
    %cst_9 = arith.constant dense<0.000000e+00> : vector<8x32xf32>
    %17 = tpu.matmul %15, %16, %cst_9 {dimension_numbers = #tpu.dot_dimension_numbers<[1], [0], [0], [1], [0, 0, 1, 1], [], []>} : vector<8x16xf32>, vector<16x32xf32>, vector<8x32xf32> -> vector<8x32xf32>
    %c0_10 = arith.constant 0 : index
    %c0_11 = arith.constant 0 : index
    %18 = vector.load %arg2[%c0_10, %c0_11] : memref<8x64xf32, #tpu.memory_space<vmem>>, vector<8x64xf32>
    %cst_12 = arith.constant 5.000000e-01 : f32
    %19 = vector.broadcast %cst_12 : f32 to vector<8x64xf32>
    %20 = arith.mulf %19, %18 : vector<8x64xf32>
    %21 = math.tanh %20 : vector<8x64xf32>
    %cst_13 = arith.constant 1.000000e+00 : f32
    %22 = vector.broadcast %cst_13 : f32 to vector<8x64xf32>
    %23 = arith.addf %21, %22 : vector<8x64xf32>
    %cst_14 = arith.constant 5.000000e-01 : f32
    %24 = vector.broadcast %cst_14 : f32 to vector<8x64xf32>
    %25 = arith.mulf %24, %23 : vector<8x64xf32>
    %cst_15 = arith.constant 1.500000e+01 : f32
    %26 = vector.broadcast %cst_15 : f32 to vector<8x64xf32>
    %27 = arith.cmpf oge, %18, %26 : vector<8x64xf32>
    %cst_16 = arith.constant -1.500000e+01 : f32
    %28 = vector.broadcast %cst_16 : f32 to vector<8x64xf32>
    %29 = arith.cmpf ole, %18, %28 : vector<8x64xf32>
    %cst_17 = arith.constant 0.000000e+00 : f32
    %30 = vector.broadcast %cst_17 : f32 to vector<8x64xf32>
    %31 = arith.select %29, %30, %25 : vector<8x64xi1>, vector<8x64xf32>
    %cst_18 = arith.constant 1.000000e+00 : f32
    %32 = vector.broadcast %cst_18 : f32 to vector<8x64xf32>
    %33 = arith.select %27, %32, %31 : vector<8x64xi1>, vector<8x64xf32>
    %c0_19 = arith.constant 0 : index
    %c0_20 = arith.constant 0 : index
    %34 = vector.load %arg4[%c0_19, %c0_20] : memref<64x32xf32, #tpu.memory_space<vmem>>, vector<64x32xf32>
    %cst_21 = arith.constant dense<0.000000e+00> : vector<8x32xf32>
    %35 = tpu.matmul %33, %34, %cst_21 {dimension_numbers = #tpu.dot_dimension_numbers<[1], [0], [0], [1], [0, 0, 1, 1], [], []>} : vector<8x64xf32>, vector<64x32xf32>, vector<8x32xf32> -> vector<8x32xf32>
    %36 = arith.addf %17, %35 : vector<8x32xf32>
    %c0_22 = arith.constant 0 : index
    %c0_23 = arith.constant 0 : index
    %37 = vector.load %arg5[%c0_22, %c0_23] : memref<8x32xf32, #tpu.memory_space<vmem>>, vector<8x32xf32>
    %38 = arith.subf %36, %37 : vector<8x32xf32>
    %c0_24 = arith.constant 0 : index
    %c0_25 = arith.constant 0 : index
    %39 = vector.load %arg6[%c0_24, %c0_25] : memref<8x32xf32, #tpu.memory_space<vmem>>, vector<8x32xf32>
    tpu.vector_store %arg6[%c0_24, %c0_25], %38 {strides = array<i32>} : memref<8x32xf32, #tpu.memory_space<vmem>>, vector<8x32xf32>,
    return
  }
  func.func @transform_0(%arg0: i32) -> (i32, i32) {
    %c0_i32 = arith.constant 0 : i32
    %c0_i32_0 = arith.constant 0 : i32
    return %arg0, %c0_i32 : i32, i32
  }
  func.func @transform_1(%arg0: i32) -> (i32, i32) {
    %c0_i32 = arith.constant 0 : i32
    %c0_i32_0 = arith.constant 0 : i32
    return %arg0, %c0_i32 : i32, i32
  }
  func.func @transform_2(%arg0: i32) -> (i32, i32) {
    %c0_i32 = arith.constant 0 : i32
    %c0_i32_0 = arith.constant 0 : i32
    %c0_i32_1 = arith.constant 0 : i32
    return %c0_i32, %c0_i32_0 : i32, i32
  }
  func.func @transform_3(%arg0: i32) -> (i32, i32) {
    %c0_i32 = arith.constant 0 : i32
    %c0_i32_0 = arith.constant 0 : i32
    %c0_i32_1 = arith.constant 0 : i32
    return %c0_i32, %c0_i32_0 : i32, i32
  }
  func.func @transform_4(%arg0: i32) -> (i32, i32) {
    %c0_i32 = arith.constant 0 : i32
    %c0_i32_0 = arith.constant 0 : i32
    return %arg0, %c0_i32 : i32, i32
  }
  func.func @transform_5(%arg0: i32) -> (i32, i32) {
    %c0_i32 = arith.constant 0 : i32
    %c0_i32_0 = arith.constant 0 : i32
    return %arg0, %c0_i32 : i32, i32
  }
}

</mosaic_0001>

<bundles_post_ra>
// kernel: tpu_custom_call.1
= control target key start
LH: loop header
LB: loop body
LE: loop exit
PB: predicated region body
PF: predicated region fallthrough
CT: control target
= control target key end

     0   :  { %s223_s0 = inlined_call_operand.vmem [shape: f32[8,16], index: 0, kind: input, shape index: {}]   ;;  %s224_s1 = inlined_call_operand.vmem [shape: f32[8,64], index: 1, kind: input, shape index: {}]   ;;  %s225_s2 = inlined_call_operand.vmem [shape: f32[16,32], index: 2, kind: input, shape index: {}]   ;;  %s226_s3 = inlined_call_operand.vmem [shape: f32[64,32], index: 3, kind: input, shape index: {}]   ;;  %s227_s4 = inlined_call_operand.vmem [shape: f32[8,32], index: 4, kind: input, shape index: {}]   ;;  %s228_s5 = inlined_call_operand.hbm [shape: f32[8,32], index: 5, kind: output, shape index: {}]  }
   0x1   :  { %v48_v0 = vld [vmem:[%s226_s3 + $0x38] sm:$0xff]  ;;  %v47_v1 = vld [vmem:[%s226_s3 + $0x30] sm:$0xff]  ;;  %v46_v2 = vld [vmem:[%s226_s3 + $0x28] sm:$0xff] }
   0x2   :  { %61 = vmatpush.msra.mxu0 %v48_v0  ;;  %v31_v3 = vld [vmem:[%s225_s2 + $0x8] sm:$0xff]  ;;  %v30_v4 = vld [vmem:[%s225_s2] sm:$0xff] }
   0x3   :  { %91 = vmatpush.msra.mxu1 %v31_v3  ;;  %v32_v5 = vld [vmem:[%s224_s1] sm:$0xff] }
   0x4   :  { %62 = vmatpush.msra.mxu0 %v47_v1  ;;  %v21_v6 = vld [vmem:[%s223_s0] sm:$0xff]  ;;  %v33_v8 = vmul.f32 0.5, %v32_v5 }
   0x5   :  { %v45_v7 = vld [vmem:[%s226_s3 + $0x20] sm:$0xff]  ;;  %v22_v9 = vmul.f32 0.5, %v21_v6 }
   0x6   :  { %10 = vsyncpa [#allocation3], 0  ;;  %63 = vmatpush.msra.mxu0 %v46_v2  ;;  %92 = vmatpush.msra.mxu1 %v30_v4  ;;  %v44_v10 = vld [vmem:[%s226_s3 + $0x18] sm:$0xff]  ;;  %120 = vtanh.f32 %v33_v8  ;;  %v43_v11 = vld [vmem:[%s226_s3 + $0x10] sm:$0xff]  ;;  %vm38_vm0 = vcmp.le.f32.partialorder %v32_v5, -15.0  ;;  %vm37_vm1 = vcmp.ge.f32.partialorder %v32_v5, 15.0 }
   0x7   :  { %122 = vtanh.f32 %v22_v9  ;;  %v42_v12 = vld [vmem:[%s226_s3 + $0x8] sm:$0xff]  ;;  %v41_v14 = vld [vmem:[%s226_s3] sm:$0xff]  ;;  %vm27_vm2 = vcmp.le.f32.partialorder %v21_v6, -15.0  ;;  %vm49_vm3 = vcmask 523264   ;;  %vm26_vm4 = vcmp.ge.f32.partialorder %v21_v6, 15.0  ;;  %s150_s15 = smov [#allocation2]  }
   0x8   :  { %64 = vmatpush.msra.mxu0 %v45_v7  ;;  %vm73_vm5 = vcmask 130048   ;;  %v97_v26 = vld [vmem:[%s227_s4] sm:$0xff]  ;;  %s106_s16 = sshll.u32 %s150_s15, 4  ;;  %s108_s19 = sshll.u32 %s228_s5, 4  ;;  %vm99_vm6 = vcmask 261120   ;;  %s107_s16 = int_to_ptr.vmem [resolvable:$true] %s106_s16  ;;  %s109_s19 = int_to_ptr.hbm [resolvable:$true] %s108_s19 }
   0xa   :  { %65 = vmatpush.msra.mxu0 %v44_v10 }
   0xc   :  { %66 = vmatpush.msra.mxu0 %v43_v11  ;;  %v121_v13 = vpop.eup %120 }
   0xd   :  { %v123_v15 = vpop.eup %122  ;;  %v35_v16 = vadd.f32 1.0, %v121_v13 }
   0xe   :  { %67 = vmatpush.msra.mxu0 %v42_v12  ;;  %v24_v17 = vadd.f32 1.0, %v123_v15 }
   0xf   :  { %v36_v18 = vmul.f32 0.5, %v35_v16 }
  0x10   :  { %68 = vmatpush.msra.mxu0 %v41_v14  ;;  %v25_v19 = vmul.f32 0.5, %v24_v17 }
  0x11   :  { %v39_v20 = vsel %vm38_vm0, 0.0, %v36_v18 }
  0x12   :  { %v40_v21 = vsel %vm37_vm1, 1.0, %v39_v20  ;;  %v28_v22 = vsel %vm27_vm2, 0.0, %v25_v19 }
  0x13   :  { %117 = vmatmul.msk.f32.vlgmr.msra.gmra.mxu0 %vm49_vm3, %v40_v21  ;;  %v29_v23 = vsel %vm26_vm4, 1.0, %v28_v22 }
  0x14   :  { %118 = vmatmul.msk.f32.vlgmr.msra.gmra.mxu1 %vm73_vm5, %v29_v23 }
  0x90   :  { %v70_v24 = vpop.f32.mrf.mxu0 }
  0x91   :  { %v94_v25 = vpop.f32.mrf.mxu1 }
  0x92   :  { %v95_v27 = vadd.f32 %v94_v25, %v70_v24 }
  0x94   :  { %v98_v28 = vsub.f32 %v95_v27, %v97_v26 }
  0x96   :  { %100 = vst.msk [vmem:[#allocation2] sm:$0xff] %vm99_vm6, %v98_v28 }
  0x97   :  { %111 = dma.vmem_to_hbm [thread:$0]  %s107_s16, 128, %s109_s19, [#allocation3]  }
  0x98   :  { %148 = dma.done.wait [#allocation3], 128  }
  0x99   :  { %149 = vsyncadd [#allocation3], 4294967168 }
  0x9a   :  { %116 = vsyncpa [#allocation3], 1 }

</bundles_post_ra>
